<compile_context>
chip_gen: v6e
topology: v6e:2x2x1
jax: 0.10.0
libtpu: 0.0.40
codegen_flags: <defaults>
</compile_context>

<pallas_src>
import jax
import jax.numpy as jnp
from jax import lax
from jax.experimental import pallas as pl
from jax.experimental.pallas import tpu as pltpu


def _round_up(n, m):
    return ((n + m - 1) // m) * m


_TILE_VMEM_BUDGET = 16 << 20  # per-tile VMEM budget; leaves ample slack in v7x's 64 MiB


def _choose_tile(B, input_dim, block_b, x_itemsize, mm_itemsize):
    """Pick the batch tile TB (sublane dim of x tiles / lane dim of the out row)."""
    # Per-row VMEM cost: double-buffered x tile + in-kernel casts + f32 h1/h2 + out row.
    per_row = (2 * input_dim * x_itemsize        # streamed x tile (double-buffered)
               + input_dim * mm_itemsize         # in-kernel x cast
               + (128 + 64) * 4                  # f32 h1 / h2 intermediates
               + 128 * mm_itemsize               # h1 cast for fc2
               + 3 * 4)                          # out row (double-buffered) + temp
    cap = max(128, (_TILE_VMEM_BUDGET // per_row) // 128 * 128)

    tb = min(_round_up(block_b, 8), cap)
    if B > 256:
        # Give the "parallel" batch axis >= 2 grid steps so both v7x TCs get work.
        tb = min(tb, _round_up(pl.cdiv(B, 2), 128))
    tb = min(tb, _round_up(B, 8))
    if tb < _round_up(B, 8):
        # Multi-step grid: keep the lane-dense (1, tb) output block a multiple of
        # 128 lanes (multiple of 256 when large, to feed the v6e/v7x MXU M dim).
        tb = max(128, tb - tb % 128)
        if tb >= 256:
            tb -= tb % 256
    return tb


def _critic_kernel(x_ref, w1_ref, b1_ref, w2_ref, b2_ref, w3_ref, b3_ref, o_ref):
    mm_dtype = w1_ref.dtype  # weights are pre-cast in the wrapper (bf16 or f32)

    # fc1 + ReLU  (MXU matmul, f32 accumulation; bias add / ReLU stay f32 on the VPU)
    h1 = jnp.dot(x_ref[...].astype(mm_dtype), w1_ref[...],
                 preferred_element_type=jnp.float32)
    h1 = jnp.maximum(h1 + b1_ref[...], 0.0)

    # fc2 + ReLU
    h2 = jnp.dot(h1.astype(mm_dtype), w2_ref[...],
                 preferred_element_type=jnp.float32)
    h2 = jnp.maximum(h2 + b2_ref[...], 0.0)

    # Output layer (64 -> 1), emitted LANE-DENSE as a (1, tb) row: contract the f32
    # (1, 64) weight row with h2 (tb, 64) over the feature axis so the result is
    # already lane-major and the store is an unmasked full-lane vst.
    row = lax.dot_general(w3_ref[...], h2,
                          dimension_numbers=(((1,), (1,)), ((), ())),
                          preferred_element_type=jnp.float32)
    o_ref[...] = (row + b3_ref[...]).astype(o_ref.dtype)


def critic_forward(x, params, *, block_b=1024, matmul_dtype=jnp.bfloat16):
    """x: (B, input_dim). params: w1(in,128) b1(1,128) w2(128,64) b2(1,64) w3(64,1) b3(1,1)."""
    B, input_dim = x.shape
    mm_itemsize = jnp.dtype(matmul_dtype).itemsize

    # Pre-cast the matmul weights once in the wrapper (halves resident VMEM for bf16
    # and removes the per-grid-step VPU re-cast).  Biases / output row stay f32.
    w1 = params["w1"].astype(matmul_dtype)
    w2 = params["w2"].astype(matmul_dtype)
    b1, b2, b3 = params["b1"], params["b2"], params["b3"]
    w3_row = params["w3"].reshape(1, -1).astype(jnp.float32)   # (1, 64)

    tb = _choose_tile(B, input_dim, block_b, x.dtype.itemsize, mm_itemsize)
    num_tiles = pl.cdiv(B, tb)
    padded_b = num_tiles * tb   # ragged last block handled by Pallas; no wrapper pad

    # Weights/biases: full-array blocks with a constant index_map -> resident in VMEM.
    def resident(arr):
        return pl.BlockSpec(arr.shape, lambda i: (0, 0))

    weight_bytes = sum(int(a.size) * a.dtype.itemsize
                       for a in (w1, b1, w2, b2, w3_row, b3))
    tile_bytes = tb * (2 * input_dim * x.dtype.itemsize   # double-buffered x tiles
                       + input_dim * mm_itemsize          # in-kernel x cast
                       + (128 + 64) * 4                   # f32 h1 / h2
                       + 128 * mm_itemsize                # h1 cast for fc2
                       + 3 * 4)                           # out row (x2) + temp
    vmem_limit = int(min(32 << 20,
                         max(8 << 20, weight_bytes + tile_bytes + (2 << 20))))

    cost = pl.CostEstimate(
        flops=2 * B * (input_dim * 128 + 128 * 64 + 64),
        transcendentals=0,
        bytes_accessed=int(B * input_dim * x.dtype.itemsize + weight_bytes + B * 4),
    )

    out = pl.pallas_call(
        _critic_kernel,
        out_shape=jax.ShapeDtypeStruct((1, padded_b), jnp.float32),
        grid=(num_tiles,),
        in_specs=[
            pl.BlockSpec((tb, input_dim), lambda i: (i, 0)),   # streamed x tiles
            resident(w1), resident(b1),
            resident(w2), resident(b2),
            resident(w3_row), resident(b3),
        ],
        # Lane-dense output: grid step i writes lanes [i*tb, (i+1)*tb) of one row.
        out_specs=pl.BlockSpec((1, tb), lambda i: (0, i)),
        compiler_params=pltpu.CompilerParams(
            dimension_semantics=("parallel",),   # shards batch tiles across TCs on v7x
            vmem_limit_bytes=vmem_limit,
        ),
        cost_estimate=cost,
    )(x, w1, b1, w2, b2, w3_row, b3)

    # (1, padded_b) row-major == batch order; drop the ragged tail, present as (B, 1).
    return out.reshape(padded_b, 1)[:B]


def init_params(key, input_dim):
    """Deterministic init mimicking torch.nn.Linear default (U[-1/sqrt(fan_in), +])."""
    dims = [(input_dim, 128), (128, 64), (64, 1)]
    params = {}
    for i, (fan_in, fan_out) in enumerate(dims, start=1):
        key, kw, kb = jax.random.split(key, 3)
        bound = 1.0 / jnp.sqrt(float(fan_in))
        params[f"w{i}"] = jax.random.uniform(
            kw, (fan_in, fan_out), jnp.float32, -bound, bound)
        params[f"b{i}"] = jax.random.uniform(
            kb, (1, fan_out), jnp.float32, -bound, bound)
    return params


def critic_ref(x, params):
    """Pure-JAX reference for correctness check (matches the torch forward)."""
    h = jnp.maximum(x @ params["w1"] + params["b1"], 0.0)
    h = jnp.maximum(h @ params["w2"] + params["b2"], 0.0)
    return h @ params["w3"] + params["b3"]


if __name__ == "__main__":
    key = jax.random.PRNGKey(0)
    key, kx = jax.random.split(key)

    batch, input_dim = 8, 32
    x = jax.random.normal(kx, (batch, input_dim), jnp.float32)
    params = init_params(key, input_dim)
    ref = critic_ref(x, params)

    # 1) f32 path, single tile (torch-semantics reference, tight tolerance).
    out = jax.block_until_ready(critic_forward(x, params, matmul_dtype=jnp.float32))
    assert out.shape == (batch, 1)
    assert jnp.allclose(out, ref, atol=1e-4, rtol=1e-4)

    # 2) default bf16 MXU path on the same inputs (looser tolerance).
    out_bf16 = jax.block_until_ready(critic_forward(x, params))
    assert out_bf16.shape == (batch, 1)
    assert jnp.allclose(out_bf16, ref, atol=5e-2, rtol=5e-2)

    # 3) ragged batch, single tile (B not a multiple of 8; no wrapper-side pad).
    key, kx2 = jax.random.split(key)
    xb = jax.random.normal(kx2, (200, input_dim), jnp.float32)
    ref_b = critic_ref(xb, params)
    out_b = jax.block_until_ready(critic_forward(xb, params, matmul_dtype=jnp.float32))
    assert out_b.shape == (200, 1)
    assert jnp.allclose(out_b, ref_b, atol=1e-4, rtol=1e-4)

    # 4) multi-step grid with a ragged LAST block (B % tb != 0), f32 path.
    key, kx3 = jax.random.split(key)
    xc = jax.random.normal(kx3, (300, input_dim), jnp.float32)
    ref_c = critic_ref(xc, params)
    out_c = jax.block_until_ready(
        critic_forward(xc, params, block_b=128, matmul_dtype=jnp.float32))
    assert out_c.shape == (300, 1)
    assert jnp.allclose(out_c, ref_c, atol=1e-4, rtol=1e-4)

    # 5) same shape on the default (bf16, big-tile) path.
    out_c_bf16 = jax.block_until_ready(critic_forward(xc, params))
    assert out_c_bf16.shape == (300, 1)
    assert jnp.allclose(out_c_bf16, ref_c, atol=5e-2, rtol=5e-2)

    print("KERNEL_OK")
</pallas_src>

<mosaic_0001>
module attributes {stable_mosaic.version = 11 : i64} {
  func.func @_critic_kernel(%arg0: i32, %arg1: memref<8x32xf32, #tpu.memory_space<vmem>>, %arg2: memref<32x128xf32, #tpu.memory_space<vmem>>, %arg3: memref<1x128xf32, #tpu.memory_space<vmem>>, %arg4: memref<128x64xf32, #tpu.memory_space<vmem>>, %arg5: memref<1x64xf32, #tpu.memory_space<vmem>>, %arg6: memref<1x64xf32, #tpu.memory_space<vmem>>, %arg7: memref<1x1xf32, #tpu.memory_space<vmem>>, %arg8: memref<1x8xf32, #tpu.memory_space<vmem>>) attributes {dimension_semantics = [#tpu.dimension_semantics<parallel>], iteration_bounds = array<i64: 1>, scalar_prefetch = 0 : i64, scratch_operands = 0 : i64, tpu.core_type = #tpu.core_type<tc>, window_params = [{transform_indices = @transform_0, window_bounds = array<i64: 8, 32>}, {pipeline_mode = #tpu.pipeline_mode<synchronous>, transform_indices = @transform_1, window_bounds = array<i64: 32, 128>}, {pipeline_mode = #tpu.pipeline_mode<synchronous>, transform_indices = @transform_2, window_bounds = array<i64: 1, 128>}, {pipeline_mode = #tpu.pipeline_mode<synchronous>, transform_indices = @transform_3, window_bounds = array<i64: 128, 64>}, {pipeline_mode = #tpu.pipeline_mode<synchronous>, transform_indices = @transform_4, window_bounds = array<i64: 1, 64>}, {pipeline_mode = #tpu.pipeline_mode<synchronous>, transform_indices = @transform_5, window_bounds = array<i64: 1, 64>}, {pipeline_mode = #tpu.pipeline_mode<synchronous>, transform_indices = @transform_6, window_bounds = array<i64: 1, 1>}, {transform_indices = @transform_7, window_bounds = array<i64: 1, 8>}]} {
    %c0 = arith.constant 0 : index
    %c0_0 = arith.constant 0 : index
    %0 = vector.load %arg1[%c0, %c0_0] : memref<8x32xf32, #tpu.memory_space<vmem>>, vector<8x32xf32>
    %c0_1 = arith.constant 0 : index
    %c0_2 = arith.constant 0 : index
    %1 = vector.load %arg2[%c0_1, %c0_2] : memref<32x128xf32, #tpu.memory_space<vmem>>, vector<32x128xf32>
    %cst = arith.constant dense<0.000000e+00> : vector<8x128xf32>
    %2 = tpu.matmul %0, %1, %cst {dimension_numbers = #tpu.dot_dimension_numbers<[1], [0], [0], [1], [0, 0, 1, 1], [], []>} : vector<8x32xf32>, vector<32x128xf32>, vector<8x128xf32> -> vector<8x128xf32>
    %c0_3 = arith.constant 0 : index
    %c0_4 = arith.constant 0 : index
    %3 = vector.load %arg3[%c0_3, %c0_4] : memref<1x128xf32, #tpu.memory_space<vmem>>, vector<1x128xf32>
    %4 = vector.broadcast %3 : vector<1x128xf32> to vector<8x128xf32>
    %5 = arith.addf %2, %4 : vector<8x128xf32>
    %cst_5 = arith.constant 0.000000e+00 : f32
    %6 = vector.broadcast %cst_5 : f32 to vector<8x128xf32>
    %7 = arith.maximumf %5, %6 : vector<8x128xf32>
    %c0_6 = arith.constant 0 : index
    %c0_7 = arith.constant 0 : index
    %8 = vector.load %arg4[%c0_6, %c0_7] : memref<128x64xf32, #tpu.memory_space<vmem>>, vector<128x64xf32>
    %cst_8 = arith.constant dense<0.000000e+00> : vector<8x64xf32>
    %9 = tpu.matmul %7, %8, %cst_8 {dimension_numbers = #tpu.dot_dimension_numbers<[1], [0], [0], [1], [0, 0, 1, 1], [], []>} : vector<8x128xf32>, vector<128x64xf32>, vector<8x64xf32> -> vector<8x64xf32>
    %c0_9 = arith.constant 0 : index
    %c0_10 = arith.constant 0 : index
    %10 = vector.load %arg5[%c0_9, %c0_10] : memref<1x64xf32, #tpu.memory_space<vmem>>, vector<1x64xf32>
    %11 = vector.broadcast %10 : vector<1x64xf32> to vector<8x64xf32>
    %12 = arith.addf %9, %11 : vector<8x64xf32>
    %cst_11 = arith.constant 0.000000e+00 : f32
    %13 = vector.broadcast %cst_11 : f32 to vector<8x64xf32>
    %14 = arith.maximumf %12, %13 : vector<8x64xf32>
    %c0_12 = arith.constant 0 : index
    %c0_13 = arith.constant 0 : index
    %15 = vector.load %arg6[%c0_12, %c0_13] : memref<1x64xf32, #tpu.memory_space<vmem>>, vector<1x64xf32>
    %cst_14 = arith.constant dense<0.000000e+00> : vector<1x8xf32>
    %16 = tpu.matmul %15, %14, %cst_14 {dimension_numbers = #tpu.dot_dimension_numbers<[1], [1], [0], [0], [0, 0, 1, 0], [], []>} : vector<1x64xf32>, vector<8x64xf32>, vector<1x8xf32> -> vector<1x8xf32>
    %c0_15 = arith.constant 0 : index
    %c0_16 = arith.constant 0 : index
    %17 = vector.load %arg7[%c0_15, %c0_16] : memref<1x1xf32, #tpu.memory_space<vmem>>, vector<1x1xf32>
    %18 = vector.broadcast %17 : vector<1x1xf32> to vector<1x8xf32>
    %19 = arith.addf %16, %18 : vector<1x8xf32>
    %c0_17 = arith.constant 0 : index
    %c0_18 = arith.constant 0 : index
    %20 = vector.load %arg8[%c0_17, %c0_18] : memref<1x8xf32, #tpu.memory_space<vmem>>, vector<1x8xf32>
    tpu.vector_store %arg8[%c0_17, %c0_18], %19 {strides = array<i32>} : memref<1x8xf32, #tpu.memory_space<vmem>>, vector<1x8xf32>,
    return
  }
  func.func @transform_0(%arg0: i32) -> (i32, i32) {
    %c0_i32 = arith.constant 0 : i32
    %c0_i32_0 = arith.constant 0 : i32
    return %arg0, %c0_i32 : i32, i32
  }
  func.func @transform_1(%arg0: i32) -> (i32, i32) {
    %c0_i32 = arith.constant 0 : i32
    %c0_i32_0 = arith.constant 0 : i32
    %c0_i32_1 = arith.constant 0 : i32
    return %c0_i32, %c0_i32_0 : i32, i32
  }
  func.func @transform_2(%arg0: i32) -> (i32, i32) {
    %c0_i32 = arith.constant 0 : i32
    %c0_i32_0 = arith.constant 0 : i32
    %c0_i32_1 = arith.constant 0 : i32
    return %c0_i32, %c0_i32_0 : i32, i32
  }
  func.func @transform_3(%arg0: i32) -> (i32, i32) {
    %c0_i32 = arith.constant 0 : i32
    %c0_i32_0 = arith.constant 0 : i32
    %c0_i32_1 = arith.constant 0 : i32
    return %c0_i32, %c0_i32_0 : i32, i32
  }
  func.func @transform_4(%arg0: i32) -> (i32, i32) {
    %c0_i32 = arith.constant 0 : i32
    %c0_i32_0 = arith.constant 0 : i32
    %c0_i32_1 = arith.constant 0 : i32
    return %c0_i32, %c0_i32_0 : i32, i32
  }
  func.func @transform_5(%arg0: i32) -> (i32, i32) {
    %c0_i32 = arith.constant 0 : i32
    %c0_i32_0 = arith.constant 0 : i32
    %c0_i32_1 = arith.constant 0 : i32
    return %c0_i32, %c0_i32_0 : i32, i32
  }
  func.func @transform_6(%arg0: i32) -> (i32, i32) {
    %c0_i32 = arith.constant 0 : i32
    %c0_i32_0 = arith.constant 0 : i32
    %c0_i32_1 = arith.constant 0 : i32
    return %c0_i32, %c0_i32_0 : i32, i32
  }
  func.func @transform_7(%arg0: i32) -> (i32, i32) {
    %c0_i32 = arith.constant 0 : i32
    %c0_i32_0 = arith.constant 0 : i32
    return %c0_i32, %arg0 : i32, i32
  }
}

</mosaic_0001>

<bundles_post_ra>
// kernel: tpu_custom_call.1
= control target key start
LH: loop header
LB: loop body
LE: loop exit
PB: predicated region body
PF: predicated region fallthrough
CT: control target
= control target key end

     0   :  { %s570_s0 = inlined_call_operand.vmem [shape: f32[8,32], index: 0, kind: input, shape index: {}]   ;;  %s571_s1 = inlined_call_operand.vmem [shape: f32[32,128], index: 1, kind: input, shape index: {}]   ;;  %s572_s2 = inlined_call_operand.vmem [shape: f32[1,128], index: 2, kind: input, shape index: {}]   ;;  %s573_s3 = inlined_call_operand.vmem [shape: f32[128,64], index: 3, kind: input, shape index: {}]   ;;  %s574_s4 = inlined_call_operand.vmem [shape: f32[1,64], index: 4, kind: input, shape index: {}]   ;;  %s575_s5 = inlined_call_operand.vmem [shape: f32[1,64], index: 5, kind: input, shape index: {}]   ;;  %s576_s6 = inlined_call_operand.<no memory space> [shape: f32[1,1], index: 6, kind: input, shape index: {}]   ;;  %s577_s7 = inlined_call_operand.hbm [shape: f32[1,8], index: 7, kind: output, shape index: {}]  }
   0x1   :  { %v12_v0 = vstv %s576_s6 }
   0x2   :  { %13 = vst [vmem:[#allocation2] sm:$0x1] %v12_v0 }
   0x3   :  { %v33_v1 = vld [vmem:[%s571_s1 + $0x18] sm:$0xff]  ;;  %v421_v2 = vmov 0.0   ;;  %v32_v3 = vld [vmem:[%s571_s1 + $0x10] sm:$0xff]  ;;  %vm422_vm0 = vmmov 0   ;;  %v31_v6 = vld [vmem:[%s571_s1 + $0x8] sm:$0xff]  ;;  %vm41_vm1 = vcmask 261120  }
   0x4   :  { %343 = vmatprep.subr.mxu0 %v421_v2  ;;  %351 = vmatprep.mubr.msk.f32.mxu0 %vm422_vm0, %v421_v2  ;;  %v131_v4 = vld [vmem:[%s573_s3 + $0x78] sm:$0xff]  ;;  %v130_v5 = vld [vmem:[%s573_s3 + $0x70] sm:$0xff]  ;;  %v129_v7 = vld [vmem:[%s573_s3 + $0x68] sm:$0xff] }
   0x5   :  { %344 = vmatpush3.msra.mxu0 %v33_v1  ;;  %354 = vmatprep.subr.mxu1 %v421_v2  ;;  %v30_v8 = vld [vmem:[%s571_s1] sm:$0xff] }
   0x6   :  { %345 = vmatprep.subr.mxu0 %v421_v2  ;;  %355 = vmatpush3.msra.mxu1 %v131_v4  ;;  %v29_v9 = vld [vmem:[%s570_s0] sm:$0xff] }
   0x7   :  { %346 = vmatpush3.msra.mxu0 %v32_v3  ;;  %356 = vmatprep.subr.mxu1 %v421_v2  ;;  %v128_v10 = vld [vmem:[%s573_s3 + $0x60] sm:$0xff] }
   0x8   :  { %347 = vmatprep.subr.mxu0 %v421_v2  ;;  %357 = vmatpush3.msra.mxu1 %v130_v5 }
   0x9   :  { %348 = vmatpush3.msra.mxu0 %v31_v6  ;;  %358 = vmatprep.subr.mxu1 %v421_v2 }
   0xa   :  { %14 = vsyncpa [#allocation4], 0  ;;  %349 = vmatprep.subr.mxu0 %v421_v2  ;;  %359 = vmatpush3.msra.mxu1 %v129_v7  ;;  %v127_v11 = vld [vmem:[%s573_s3 + $0x58] sm:$0xff]  ;;  %v126_v12 = vld [vmem:[%s573_s3 + $0x50] sm:$0xff]  ;;  %v423_v29 = vmov 0   ;;  %vm221_vm2 = vcmask 523264   ;;  %v217_v36 = vlaneseq }
   0xb   :  { %350 = vmatpush3.msra.mxu0 %v30_v8  ;;  %360 = vmatprep.subr.mxu1 %v421_v2  ;;  %v125_v13 = vld [vmem:[%s573_s3 + $0x48] sm:$0xff]  ;;  %v124_v14 = vld [vmem:[%s573_s3 + $0x40] sm:$0xff]  ;;  %v123_v15 = vld [vmem:[%s573_s3 + $0x38] sm:$0xff]  ;;  %s424_s0 = smov [#allocation3]   ;;  %vm298_vm3 = vcmask 57344  }
   0xc   :  { %352 = vmatmul.mubr.msk.f32.vlgmr.msra.gmra.mxu0 %vm41_vm1, %v29_v9  ;;  %361 = vmatpush3.msra.mxu1 %v128_v10  ;;  %v122_v16 = vld [vmem:[%s573_s3 + $0x30] sm:$0xff]  ;;  %v121_v17 = vld [vmem:[%s573_s3 + $0x28] sm:$0xff]  ;;  %v120_v18 = vld [vmem:[%s573_s3 + $0x20] sm:$0xff]  ;;  %v218_v37 = vshrl.u32 %v217_v36, 7  ;;  %s306_s21 = sshll.u32 %s424_s0, 4  ;;  %s307_s21 = int_to_ptr.vmem [resolvable:$true] %s306_s21 }
   0xd   :  { %362 = vmatprep.subr.mxu1 %v421_v2  ;;  %386 = vmatprep.mubr.msk.f32.mxu1 %vm422_vm0, %v421_v2  ;;  %v119_v19 = vld [vmem:[%s573_s3 + $0x18] sm:$0xff]  ;;  %v118_v20 = vld [vmem:[%s573_s3 + $0x10] sm:$0xff]  ;;  %v117_v21 = vld [vmem:[%s573_s3 + $0x8] sm:$0xff]  ;;  %s403_s22 = scalar_lea.vmem %s307_s21, 32  ;;  %p404_p1 = scmp.lt.s32.totalorder %s307_s21, %s307_s21 }
   0xe   :  { %363 = vmatpush3.msra.mxu1 %v127_v11  ;;  %389 = vmatprep.subr.mxu0 %v421_v2  ;;  %v116_v22 = vld [vmem:[%s573_s3] sm:$0xff]  ;;  %v219_v38 = vsub.s32 0, %v218_v37 }
   0xf   :  { %364 = vmatprep.subr.mxu1 %v421_v2  ;;  %391 = vmatprep.mubr.msk.f32.mxu0 %vm422_vm0, %v421_v2  ;;  %v314_v23 = vld [vmem:[%s572_s2] ss:$0 sm:$0xff] }
  0x10   :  { %365 = vmatpush3.msra.mxu1 %v126_v12  ;;  %v211_v28 = vld [vmem:[#allocation2] sm:$0x1]  ;;  %398 = vset.pattern.permute.xlu0 %v423_v29 }
  0x11   :  { %366 = vmatprep.subr.mxu1 %v421_v2  ;;  %214 = vperm.xlu0 %398, %v211_v28   ;;  %v316_v30 = vld [vmem:[%s574_s4] ss:$0 sm:$0xff]  ;;  %s399_s4 = scalar_lea.vmem %s307_s21, 16 }
  0x12   :  { %367 = vmatpush3.msra.mxu1 %v125_v13  ;;  %v210_v35 = vld [vmem:[%s575_s5] sm:$0x1]  ;;  %p400_p0 = scmp.ne.s32.totalorder %s307_s21, %s399_s4  ;;  %p405_p2 = scmp.lt.s32.totalorder %s403_s22, %s399_s4 }
  0x13   :  { %368 = vmatprep.subr.mxu1 %v421_v2 }
  0x14   :  { %369 = vmatpush3.msra.mxu1 %v124_v14  ;;  %p406_p3 = por %p405_p2, %p404_p1 }
  0x15   :  { %370 = vmatprep.subr.mxu1 %v421_v2 }
  0x16   :  { %371 = vmatpush3.msra.mxu1 %v123_v15  ;;  %p407_p4 = pnand %p406_p3, %p400_p0 }
  0x17   :  { %372 = vmatprep.subr.mxu1 %v421_v2 }
  0x18   :  { %373 = vmatpush3.msra.mxu1 %v122_v16 }
  0x19   :  { %374 = vmatprep.subr.mxu1 %v421_v2 }
  0x1a   :  { %375 = vmatpush3.msra.mxu1 %v121_v17 }
  0x1b   :  { %376 = vmatprep.subr.mxu1 %v421_v2 }
  0x1c   :  { %377 = vmatpush3.msra.mxu1 %v120_v18 }
  0x1d   :  { %378 = vmatprep.subr.mxu1 %v421_v2 }
  0x1e   :  { %379 = vmatpush3.msra.mxu1 %v119_v19 }
  0x1f   :  { %380 = vmatprep.subr.mxu1 %v421_v2 }
  0x20   :  { %381 = vmatpush3.msra.mxu1 %v118_v20 }
  0x21   :  { %382 = vmatprep.subr.mxu1 %v421_v2 }
  0x22   :  { %383 = vmatpush3.msra.mxu1 %v117_v21 }
  0x23   :  { %384 = vmatprep.subr.mxu1 %v421_v2 }
  0x24   :  { %385 = vmatpush3.msra.mxu1 %v116_v22 }
  0x8c   :  { %v215_v39 = vpop.permute.xlu0 %214 }
  0x8d   :  { %v220_v40 = vrot.slane %v215_v39, %v219_v38 }
  0xcc   :  { %v111_v24 = vpop.f32.mrf.mxu0 }
  0xcd   :  { %v112_v25 = vadd.f32 %v314_v23, %v111_v24 }
  0xce   :  { %v353_v26 = vpop.f32.mrf.mxu0 }
  0xcf   :  { %v115_v27 = vmax.f32 %v112_v25, 0.0 }
  0xd1   :  { %387 = vmatmul.mubr.f32.vlgmr.msra.gmra.mxu1 %v115_v27 }
 0x191   :  { %v205_v31 = vpop.f32.mrf.mxu1 }
 0x192   :  { %v206_v32 = vadd.f32 %v316_v30, %v205_v31 }
 0x193   :  { %v388_v33 = vpop.f32.mrf.mxu1 }
 0x194   :  { %v209_v34 = vmax.f32 %v206_v32, 0.0 }
 0x196   :  { %390 = vmatpush3.xpose.msk.msra.mxu0 %vm221_vm2, %v209_v34 }
 0x199   :  { %392 = vmatmul.mubr.msk.f32.vlgmr.msra.gmra.mxu0 %vm221_vm2, %v210_v35 }
 0x259   :  { %v294_v41 = vpop.f32.mrf.mxu0 }
 0x25a   :  { %v295_v42 = vadd.f32 %v294_v41, %v220_v40 }
 0x25b   :  { %v393_v43 = vpop.f32.mrf.mxu0 }
 0x25c   :  { %299 = vst.msk [vmem:[#allocation3] sm:$0x1] %vm298_vm3, %v295_v42 }
 0x25d   :  { %410 = shalt.err (!%p407_p4)
}
 0x25e   :  { %309 = dma.vmem_to_hbm [thread:$0]  %s307_s21, 16, %s577_s7, [#allocation4]  }
 0x25f   :  { %419 = dma.done.wait [#allocation4], 16  }
 0x260   :  { %420 = vsyncadd [#allocation4], 4294967280 }
 0x261   :  { %313 = vsyncpa [#allocation4], 1 }

</bundles_post_ra>
